<compile_context>
chip_gen: v7x
topology: tpu7x:2x2x1
jax: 0.10.0
libtpu: 0.0.40
codegen_flags: <defaults>
</compile_context>

<pallas_src>
import jax
import jax.numpy as jnp
from jax.experimental import pallas as pl
from jax.experimental.pallas import tpu as pltpu

LANE = 128
SUBLANE = 16  # keep batch tiles a multiple of 16 (bf16 sublane packing)


def _round_up(x, m):
    return (x + m - 1) // m * m


def autoencoder_kernel(x_ref,
                       w1_ref, b1_ref,
                       w2_ref, b2_ref,
                       w3_ref, b3_ref,
                       w4_ref, b4_ref,
                       o_ref):
    """One (tm, F) batch tile through the 4-layer autoencoder.

    x arrives f32 at its true feature width F and is cast to the compute dtype
    (bf16 by default) in VMEM.  Matmuls accumulate in f32 on the MXU; bias add
    + ReLU run in f32 on the VPU; activations are cast back to the compute
    dtype before the next matmul.  Layer 4's weight is only padded on its
    contraction dim, so the output is produced at the true F width.
    """
    cdtype = w1_ref.dtype
    x = x_ref[...].astype(cdtype)

    # encoder
    h = jnp.dot(x, w1_ref[...], preferred_element_type=jnp.float32) + b1_ref[...]
    h = jnp.maximum(h, 0.0).astype(cdtype)
    h = jnp.dot(h, w2_ref[...], preferred_element_type=jnp.float32) + b2_ref[...]
    h = jnp.maximum(h, 0.0).astype(cdtype)

    # decoder
    h = jnp.dot(h, w3_ref[...], preferred_element_type=jnp.float32) + b3_ref[...]
    h = jnp.maximum(h, 0.0).astype(cdtype)
    out = jnp.dot(h, w4_ref[...], preferred_element_type=jnp.float32) + b4_ref[...]

    # Note: if the consumer only needs the per-sample reconstruction error,
    # a fused jnp.sum((out - x)**2, axis=-1, keepdims=True) output here would
    # drop output HBM traffic another ~32x.  Kept as the full reconstruction
    # to match the PyTorch module's forward semantics.
    o_ref[...] = out.astype(o_ref.dtype)


def prepare_params(params, *, use_bf16=True):
    """Pad + cast weights/biases ONCE (outside the per-call path).

    params: dict of w{i}: [in, out], b{i}: [1, out] (w transposed vs PyTorch).
    Hidden dims are zero-padded to multiples of 128 lanes (mathematically
    exact: zero weight rows/cols, zero bias, ReLU(0)=0).  The layer-1
    contraction dim and layer-4 output dim stay at the true feature size so
    x / out are streamed unpadded.
    """
    w1, b1 = params["w1"], params["b1"]
    w2, b2 = params["w2"], params["b2"]
    w3, b3 = params["w3"], params["b3"]
    w4, b4 = params["w4"], params["b4"]

    F = w1.shape[0]
    H = w1.shape[1]
    H2 = w2.shape[1]
    Hp = _round_up(H, LANE)
    H2p = _round_up(H2, LANE)

    cdtype = jnp.bfloat16 if use_bf16 else jnp.float32

    def pad2(a, rows, cols, dtype):
        r, c = a.shape
        return jnp.pad(a, ((0, rows - r), (0, cols - c))).astype(dtype)

    return {
        "w1": pad2(w1, F, Hp, cdtype),    "b1": pad2(b1, 1, Hp, jnp.float32),
        "w2": pad2(w2, Hp, H2p, cdtype),  "b2": pad2(b2, 1, H2p, jnp.float32),
        "w3": pad2(w3, H2p, Hp, cdtype),  "b3": pad2(b3, 1, Hp, jnp.float32),
        "w4": pad2(w4, Hp, F, cdtype),    "b4": pad2(b4, 1, F, jnp.float32),
        "F": F, "H": H, "H2": H2,
    }


def anomaly_detector_forward(x, prepared, *, block_m=512):
    """x: [B, input_size] float32, prepared: output of prepare_params().

    Returns [B, input_size] float32 (same semantics as the PyTorch module).
    """
    B, F = x.shape
    assert F == prepared["F"], "input feature size mismatch with prepared params"

    w1p, b1p = prepared["w1"], prepared["b1"]
    w2p, b2p = prepared["w2"], prepared["b2"]
    w3p, b3p = prepared["w3"], prepared["b3"]
    w4p, b4p = prepared["w4"], prepared["b4"]
    Hp, H2p = w1p.shape[1], w2p.shape[1]

    # Batch tiling: tm rows per grid step (multiple of 16).  Guarantee >= 2
    # grid steps whenever the batch allows it, so the "parallel" batch axis
    # shards across both TensorCores on v7x.
    b_al = _round_up(B, SUBLANE)
    tm = min(block_m, b_al)
    if b_al >= 2 * SUBLANE:
        tm = min(tm, _round_up(b_al // 2, SUBLANE))
    B_pad = _round_up(B, tm)
    grid = (B_pad // tm,)

    x_p = x if B_pad == B else jnp.pad(x, ((0, B_pad - B), (0, 0)))

    def resident(shape):
        # Constant block index -> DMA'd once on step 0, stays VMEM-resident.
        return pl.BlockSpec(shape, lambda i: (0, 0))

    cbytes = jnp.dtype(w1p.dtype).itemsize
    weight_bytes = (w1p.size + w2p.size + w3p.size + w4p.size) * cbytes \
                   + (b1p.size + b2p.size + b3p.size + b4p.size) * 4
    cost = pl.CostEstimate(
        flops=2 * B_pad * (F * Hp + Hp * H2p + H2p * Hp + Hp * F),
        transcendentals=0,
        bytes_accessed=2 * B_pad * F * 4 + weight_bytes,
    )

    out = pl.pallas_call(
        autoencoder_kernel,
        out_shape=jax.ShapeDtypeStruct((B_pad, F), jnp.float32),
        grid=grid,
        in_specs=[
            pl.BlockSpec((tm, F), lambda i: (i, 0)),   # x tile, streamed unpadded
            resident(w1p.shape), resident(b1p.shape),
            resident(w2p.shape), resident(b2p.shape),
            resident(w3p.shape), resident(b3p.shape),
            resident(w4p.shape), resident(b4p.shape),
        ],
        out_specs=pl.BlockSpec((tm, F), lambda i: (i, 0)),  # true-width output
        compiler_params=pltpu.CompilerParams(
            dimension_semantics=("parallel",),
        ),
        cost_estimate=cost,
    )(x_p, w1p, b1p, w2p, b2p, w3p, b3p, w4p, b4p)

    return out if B_pad == B else out[:B]


def init_params(key, input_size, hidden_size):
    """Deterministic init matching PyTorch nn.Linear default
    (U[-1/sqrt(fan_in), +1/sqrt(fan_in)]).  Weights stored as
    [in_features, out_features] (transposed vs. PyTorch)."""
    half = hidden_size // 2
    dims = [
        (input_size, hidden_size),   # encoder linear 1
        (hidden_size, half),         # encoder linear 2
        (half, hidden_size),         # decoder linear 1
        (hidden_size, input_size),   # decoder linear 2
    ]
    params = {}
    keys = jax.random.split(key, 2 * len(dims))
    for i, (fan_in, fan_out) in enumerate(dims):
        bound = 1.0 / jnp.sqrt(fan_in)
        w = jax.random.uniform(keys[2 * i], (fan_in, fan_out),
                               minval=-bound, maxval=bound, dtype=jnp.float32)
        b = jax.random.uniform(keys[2 * i + 1], (1, fan_out),
                               minval=-bound, maxval=bound, dtype=jnp.float32)
        params[f"w{i + 1}"] = w
        params[f"b{i + 1}"] = b
    return params


def reference_forward(x, params, *, use_bf16=True):
    """Pure-JAX reference applying the same operand quantization as the kernel."""
    cdtype = jnp.bfloat16 if use_bf16 else jnp.float32

    def layer(h, w, b, relu):
        y = jnp.dot(h.astype(cdtype), w.astype(cdtype),
                    preferred_element_type=jnp.float32) + b
        return jnp.maximum(y, 0.0) if relu else y

    h = layer(x, params["w1"], params["b1"], True)
    h = layer(h, params["w2"], params["b2"], True)
    h = layer(h, params["w3"], params["b3"], True)
    return layer(h, params["w4"], params["b4"], False)


if __name__ == "__main__":
    input_size = 32
    hidden_size = 64
    batch = 8

    key = jax.random.PRNGKey(0)
    kx, kp = jax.random.split(key)
    x = jax.random.normal(kx, (batch, input_size), dtype=jnp.float32)
    params = init_params(kp, input_size, hidden_size)

    # Default bf16 compute path vs identically quantized JAX reference.
    prepared_bf16 = prepare_params(params, use_bf16=True)
    out = jax.block_until_ready(anomaly_detector_forward(x, prepared_bf16))
    ref = reference_forward(x, params, use_bf16=True)
    assert out.shape == (batch, input_size)
    assert jnp.allclose(out, ref, atol=2e-3, rtol=2e-3), \
        float(jnp.max(jnp.abs(out - ref)))

    # f32 path (use when anomaly thresholds are tight).  Loose tolerance here
    # only guards the padding/layout plumbing; MXU-vs-XLA matmul precision
    # policies may differ by O(1e-3) at default precision.
    prepared_f32 = prepare_params(params, use_bf16=False)
    out32 = jax.block_until_ready(anomaly_detector_forward(x, prepared_f32))
    ref32 = reference_forward(x, params, use_bf16=False)
    assert jnp.allclose(out32, ref32, atol=1e-2, rtol=1e-2), \
        float(jnp.max(jnp.abs(out32 - ref32)))

    print("KERNEL_OK")
</pallas_src>

<mosaic_0001>
module attributes {stable_mosaic.version = 11 : i64} {
  func.func @autoencoder_kernel(%arg0: i32, %arg1: memref<16x32xf32, #tpu.memory_space<vmem>>, %arg2: memref<32x128xbf16, #tpu.memory_space<vmem>>, %arg3: memref<1x128xf32, #tpu.memory_space<vmem>>, %arg4: memref<128x128xbf16, #tpu.memory_space<vmem>>, %arg5: memref<1x128xf32, #tpu.memory_space<vmem>>, %arg6: memref<128x128xbf16, #tpu.memory_space<vmem>>, %arg7: memref<1x128xf32, #tpu.memory_space<vmem>>, %arg8: memref<128x32xbf16, #tpu.memory_space<vmem>>, %arg9: memref<1x32xf32, #tpu.memory_space<vmem>>, %arg10: memref<16x32xf32, #tpu.memory_space<vmem>>) attributes {dimension_semantics = [#tpu.dimension_semantics<parallel>], iteration_bounds = array<i64: 1>, scalar_prefetch = 0 : i64, scratch_operands = 0 : i64, tpu.core_type = #tpu.core_type<tc>, window_params = [{transform_indices = @transform_0, window_bounds = array<i64: 16, 32>}, {pipeline_mode = #tpu.pipeline_mode<synchronous>, transform_indices = @transform_1, window_bounds = array<i64: 32, 128>}, {pipeline_mode = #tpu.pipeline_mode<synchronous>, transform_indices = @transform_2, window_bounds = array<i64: 1, 128>}, {pipeline_mode = #tpu.pipeline_mode<synchronous>, transform_indices = @transform_3, window_bounds = array<i64: 128, 128>}, {pipeline_mode = #tpu.pipeline_mode<synchronous>, transform_indices = @transform_4, window_bounds = array<i64: 1, 128>}, {pipeline_mode = #tpu.pipeline_mode<synchronous>, transform_indices = @transform_5, window_bounds = array<i64: 128, 128>}, {pipeline_mode = #tpu.pipeline_mode<synchronous>, transform_indices = @transform_6, window_bounds = array<i64: 1, 128>}, {pipeline_mode = #tpu.pipeline_mode<synchronous>, transform_indices = @transform_7, window_bounds = array<i64: 128, 32>}, {pipeline_mode = #tpu.pipeline_mode<synchronous>, transform_indices = @transform_8, window_bounds = array<i64: 1, 32>}, {transform_indices = @transform_9, window_bounds = array<i64: 16, 32>}]} {
    %c0 = arith.constant 0 : index
    %c0_0 = arith.constant 0 : index
    %0 = vector.load %arg1[%c0, %c0_0] : memref<16x32xf32, #tpu.memory_space<vmem>>, vector<16x32xf32>
    %1 = arith.truncf %0 : vector<16x32xf32> to vector<16x32xbf16>
    %c0_1 = arith.constant 0 : index
    %c0_2 = arith.constant 0 : index
    %2 = vector.load %arg2[%c0_1, %c0_2] : memref<32x128xbf16, #tpu.memory_space<vmem>>, vector<32x128xbf16>
    %cst = arith.constant dense<0.000000e+00> : vector<16x128xf32>
    %3 = tpu.matmul %1, %2, %cst {dimension_numbers = #tpu.dot_dimension_numbers<[1], [0], [0], [1], [0, 0, 1, 1], [], []>} : vector<16x32xbf16>, vector<32x128xbf16>, vector<16x128xf32> -> vector<16x128xf32>
    %c0_3 = arith.constant 0 : index
    %c0_4 = arith.constant 0 : index
    %4 = vector.load %arg3[%c0_3, %c0_4] : memref<1x128xf32, #tpu.memory_space<vmem>>, vector<1x128xf32>
    %5 = vector.broadcast %4 : vector<1x128xf32> to vector<16x128xf32>
    %6 = arith.addf %3, %5 : vector<16x128xf32>
    %cst_5 = arith.constant 0.000000e+00 : f32
    %7 = vector.broadcast %cst_5 : f32 to vector<16x128xf32>
    %8 = arith.maximumf %6, %7 : vector<16x128xf32>
    %9 = arith.truncf %8 : vector<16x128xf32> to vector<16x128xbf16>
    %c0_6 = arith.constant 0 : index
    %c0_7 = arith.constant 0 : index
    %10 = vector.load %arg4[%c0_6, %c0_7] : memref<128x128xbf16, #tpu.memory_space<vmem>>, vector<128x128xbf16>
    %cst_8 = arith.constant dense<0.000000e+00> : vector<16x128xf32>
    %11 = tpu.matmul %9, %10, %cst_8 {dimension_numbers = #tpu.dot_dimension_numbers<[1], [0], [0], [1], [0, 0, 1, 1], [], []>} : vector<16x128xbf16>, vector<128x128xbf16>, vector<16x128xf32> -> vector<16x128xf32>
    %c0_9 = arith.constant 0 : index
    %c0_10 = arith.constant 0 : index
    %12 = vector.load %arg5[%c0_9, %c0_10] : memref<1x128xf32, #tpu.memory_space<vmem>>, vector<1x128xf32>
    %13 = vector.broadcast %12 : vector<1x128xf32> to vector<16x128xf32>
    %14 = arith.addf %11, %13 : vector<16x128xf32>
    %cst_11 = arith.constant 0.000000e+00 : f32
    %15 = vector.broadcast %cst_11 : f32 to vector<16x128xf32>
    %16 = arith.maximumf %14, %15 : vector<16x128xf32>
    %17 = arith.truncf %16 : vector<16x128xf32> to vector<16x128xbf16>
    %c0_12 = arith.constant 0 : index
    %c0_13 = arith.constant 0 : index
    %18 = vector.load %arg6[%c0_12, %c0_13] : memref<128x128xbf16, #tpu.memory_space<vmem>>, vector<128x128xbf16>
    %cst_14 = arith.constant dense<0.000000e+00> : vector<16x128xf32>
    %19 = tpu.matmul %17, %18, %cst_14 {dimension_numbers = #tpu.dot_dimension_numbers<[1], [0], [0], [1], [0, 0, 1, 1], [], []>} : vector<16x128xbf16>, vector<128x128xbf16>, vector<16x128xf32> -> vector<16x128xf32>
    %c0_15 = arith.constant 0 : index
    %c0_16 = arith.constant 0 : index
    %20 = vector.load %arg7[%c0_15, %c0_16] : memref<1x128xf32, #tpu.memory_space<vmem>>, vector<1x128xf32>
    %21 = vector.broadcast %20 : vector<1x128xf32> to vector<16x128xf32>
    %22 = arith.addf %19, %21 : vector<16x128xf32>
    %cst_17 = arith.constant 0.000000e+00 : f32
    %23 = vector.broadcast %cst_17 : f32 to vector<16x128xf32>
    %24 = arith.maximumf %22, %23 : vector<16x128xf32>
    %25 = arith.truncf %24 : vector<16x128xf32> to vector<16x128xbf16>
    %c0_18 = arith.constant 0 : index
    %c0_19 = arith.constant 0 : index
    %26 = vector.load %arg8[%c0_18, %c0_19] : memref<128x32xbf16, #tpu.memory_space<vmem>>, vector<128x32xbf16>
    %cst_20 = arith.constant dense<0.000000e+00> : vector<16x32xf32>
    %27 = tpu.matmul %25, %26, %cst_20 {dimension_numbers = #tpu.dot_dimension_numbers<[1], [0], [0], [1], [0, 0, 1, 1], [], []>} : vector<16x128xbf16>, vector<128x32xbf16>, vector<16x32xf32> -> vector<16x32xf32>
    %c0_21 = arith.constant 0 : index
    %c0_22 = arith.constant 0 : index
    %28 = vector.load %arg9[%c0_21, %c0_22] : memref<1x32xf32, #tpu.memory_space<vmem>>, vector<1x32xf32>
    %29 = vector.broadcast %28 : vector<1x32xf32> to vector<16x32xf32>
    %30 = arith.addf %27, %29 : vector<16x32xf32>
    %c0_23 = arith.constant 0 : index
    %c0_24 = arith.constant 0 : index
    %31 = vector.load %arg10[%c0_23, %c0_24] : memref<16x32xf32, #tpu.memory_space<vmem>>, vector<16x32xf32>
    tpu.vector_store %arg10[%c0_23, %c0_24], %30 {strides = array<i32>} : memref<16x32xf32, #tpu.memory_space<vmem>>, vector<16x32xf32>,
    return
  }
  func.func @transform_0(%arg0: i32) -> (i32, i32) {
    %c0_i32 = arith.constant 0 : i32
    %c0_i32_0 = arith.constant 0 : i32
    return %arg0, %c0_i32 : i32, i32
  }
  func.func @transform_1(%arg0: i32) -> (i32, i32) {
    %c0_i32 = arith.constant 0 : i32
    %c0_i32_0 = arith.constant 0 : i32
    %c0_i32_1 = arith.constant 0 : i32
    return %c0_i32, %c0_i32_0 : i32, i32
  }
  func.func @transform_2(%arg0: i32) -> (i32, i32) {
    %c0_i32 = arith.constant 0 : i32
    %c0_i32_0 = arith.constant 0 : i32
    %c0_i32_1 = arith.constant 0 : i32
    return %c0_i32, %c0_i32_0 : i32, i32
  }
  func.func @transform_3(%arg0: i32) -> (i32, i32) {
    %c0_i32 = arith.constant 0 : i32
    %c0_i32_0 = arith.constant 0 : i32
    %c0_i32_1 = arith.constant 0 : i32
    return %c0_i32, %c0_i32_0 : i32, i32
  }
  func.func @transform_4(%arg0: i32) -> (i32, i32) {
    %c0_i32 = arith.constant 0 : i32
    %c0_i32_0 = arith.constant 0 : i32
    %c0_i32_1 = arith.constant 0 : i32
    return %c0_i32, %c0_i32_0 : i32, i32
  }
  func.func @transform_5(%arg0: i32) -> (i32, i32) {
    %c0_i32 = arith.constant 0 : i32
    %c0_i32_0 = arith.constant 0 : i32
    %c0_i32_1 = arith.constant 0 : i32
    return %c0_i32, %c0_i32_0 : i32, i32
  }
  func.func @transform_6(%arg0: i32) -> (i32, i32) {
    %c0_i32 = arith.constant 0 : i32
    %c0_i32_0 = arith.constant 0 : i32
    %c0_i32_1 = arith.constant 0 : i32
    return %c0_i32, %c0_i32_0 : i32, i32
  }
  func.func @transform_7(%arg0: i32) -> (i32, i32) {
    %c0_i32 = arith.constant 0 : i32
    %c0_i32_0 = arith.constant 0 : i32
    %c0_i32_1 = arith.constant 0 : i32
    return %c0_i32, %c0_i32_0 : i32, i32
  }
  func.func @transform_8(%arg0: i32) -> (i32, i32) {
    %c0_i32 = arith.constant 0 : i32
    %c0_i32_0 = arith.constant 0 : i32
    %c0_i32_1 = arith.constant 0 : i32
    return %c0_i32, %c0_i32_0 : i32, i32
  }
  func.func @transform_9(%arg0: i32) -> (i32, i32) {
    %c0_i32 = arith.constant 0 : i32
    %c0_i32_0 = arith.constant 0 : i32
    return %arg0, %c0_i32 : i32, i32
  }
}

</mosaic_0001>

<bundles_post_ra>
// kernel: tpu_custom_call.1
= control target key start
LH: loop header
LB: loop body
LE: loop exit
PB: predicated region body
PF: predicated region fallthrough
CT: control target
= control target key end

     0   :  { %14 = vsyncpa [#allocation3], 0  ;;  %s932_s0 = inlined_call_operand.vmem [shape: f32[16,32], index: 0, kind: input, shape index: {}]   ;;  %s933_s1 = inlined_call_operand.hbm [shape: bf16[32,128], index: 1, kind: input, shape index: {}]   ;;  %s934_s2 = inlined_call_operand.vmem [shape: f32[1,128], index: 2, kind: input, shape index: {}]   ;;  %s935_s3 = inlined_call_operand.vmem [shape: bf16[128,128], index: 3, kind: input, shape index: {}]   ;;  %s936_s4 = inlined_call_operand.vmem [shape: f32[1,128], index: 4, kind: input, shape index: {}]   ;;  %s937_s5 = inlined_call_operand.hbm [shape: bf16[128,128], index: 5, kind: input, shape index: {}]   ;;  %s938_s6 = inlined_call_operand.vmem [shape: f32[1,128], index: 6, kind: input, shape index: {}]   ;;  %s939_s7 = inlined_call_operand.vmem [shape: bf16[128,32], index: 7, kind: input, shape index: {}]   ;;  %s940_s8 = inlined_call_operand.vmem [shape: f32[1,32], index: 8, kind: input, shape index: {}]   ;;  %s941_s9 = inlined_call_operand.hbm [shape: f32[16,32], index: 9, kind: output, shape index: {}]  }
   0x1   :  { %15 = vsyncpa [#allocation6], 0 }
   0x2   :  { %16 = vsyncpa [#allocation4], 0  ;;  %s734_s30 = smov [#allocation2]   ;;  %s662_s13 = scalar_lea.hbm %s933_s1, 256 }
   0x3   :  { %s24_s10 = sshll.u32 %s734_s30, 4  ;;  %p663_p0 = scmp.ne.s32.totalorder %s933_s1, %s662_s13  ;;  %s25_s10 = int_to_ptr.vmem [resolvable:$true] %s24_s10 }
   0x4   :  { %p666_p1 = scmp.lt.u32.totalorder %s662_s13, %s933_s1 }
   0x6   :  { %p668_p2 = pnand %p666_p1, %p663_p0 }
   0x8   :  { %671 = shalt.err (!%p668_p2)
}
   0x9   :  { %s672_s18 = scalar_lea.vmem %s25_s10, 256  ;;  %p677_p4 = scmp.lt.s32.totalorder %s25_s10, %s25_s10 }
   0xa   :  { %p673_p3 = scmp.ne.s32.totalorder %s25_s10, %s672_s18  ;;  %p678_p5 = scmp.lt.s32.totalorder %s672_s18, %s672_s18 }
   0xc   :  { %p679_p6 = por %p678_p5, %p677_p4 }
   0xe   :  { %p680_p7 = pnand %p679_p6, %p673_p3 }
  0x10   :  { %683 = shalt.err (!%p680_p7)
}
  0x11   :  { %s735_s19 = smov 64   ;;  %s736_s20 = smov 4  }
  0x12   :  { %30 = dma.hbm_to_vmem [thread:$0]  %s933_s1, 256, %s25_s10, [#allocation3], %s735_s19, %s735_s19, %s736_s20  }
  0x13   :  { %s737_s23 = smov [#allocation5]   ;;  %s684_s27 = scalar_lea.hbm %s937_s5, 1024 }
  0x14   :  { %s42_s24 = sshll.u32 %s737_s23, 4  ;;  %p685_p8 = scmp.ne.s32.totalorder %s937_s5, %s684_s27  ;;  %s43_s24 = int_to_ptr.vmem [resolvable:$true] %s42_s24 }
  0x15   :  { %p688_p9 = scmp.lt.u32.totalorder %s684_s27, %s937_s5 }
  0x17   :  { %p690_p10 = pnand %p688_p9, %p685_p8 }
  0x19   :  { %693 = shalt.err (!%p690_p10)
}
  0x1a   :  { %s694_s12 = scalar_lea.vmem %s43_s24, 1024  ;;  %p699_p12 = scmp.lt.s32.totalorder %s43_s24, %s43_s24 }
  0x1b   :  { %p695_p11 = scmp.ne.s32.totalorder %s43_s24, %s694_s12  ;;  %p700_p13 = scmp.lt.s32.totalorder %s694_s12, %s694_s12 }
  0x1d   :  { %p701_p0 = por %p700_p13, %p699_p12 }
  0x1f   :  { %p702_p1 = pnand %p701_p0, %p695_p11 }
  0x21   :  { %705 = shalt.err (!%p702_p1)
}
  0x22   :  { %48 = dma.hbm_to_vmem [thread:$0]  %s937_s5, 1024, %s43_s24, [#allocation6], %s735_s19, %s735_s19, %s736_s20  }
  0x23   :  { %728 = dma.done.wait [#allocation3], 256  }
  0x24   :  { %729 = vsyncadd [#allocation3], 4294967040 }
  0x25   :  { %730 = dma.done.wait [#allocation6], 1024  }
  0x26   :  { %731 = vsyncadd [#allocation6], 4294966272  ;;  %v738_v0 = vmov 0.0   ;;  %vm739_vm0 = vmmov 0   ;;  %v636_v1 = vld [vmem:[#allocation2] sm:$0xff]   ;;  %v637_v2 = vld [vmem:[#allocation2 + $0x8] sm:$0xff]  }
  0x27   :  { %559 = vmatprep.subr.bf16.mxu0 %v738_v0  ;;  %563 = vmatprep.mubr.msk.bf16.mxu0 %vm739_vm0, %v738_v0  ;;  %v62_v3 = vld [vmem:[%s932_s0] sm:$0xff]  ;;  %v63_v4 = vld [vmem:[%s932_s0 + $0x8] sm:$0xff]  ;;  %vm88_vm1 = vcmask 261120   ;;  %v640_v8 = vld [vmem:[%s935_s3 + $0x10] sm:$0xff]  }
  0x28   :  { %567 = vmatprep.subr.bf16.mxu1 %v738_v0  ;;  %583 = vmatprep.mubr.msk.bf16.mxu1 %vm739_vm0, %v738_v0  ;;  %v638_v5 = vld [vmem:[%s935_s3] sm:$0xff]   ;;  %v64_v6 = vpack.c.bf16 %v63_v4, %v62_v3  ;;  %v639_v7 = vld [vmem:[%s935_s3 + $0x8] sm:$0xff]   ;;  %v641_v9 = vld [vmem:[%s935_s3 + $0x18] sm:$0xff]  }
  0x29   :  { %560 = vmatpush3.bf16.msra.mxu0 %v636_v1  ;;  %568 = vmatpush3.bf16.msra.mxu1 %v638_v5  ;;  %v642_v10 = vld [vmem:[%s935_s3 + $0x20] sm:$0xff]   ;;  %v643_v11 = vld [vmem:[%s935_s3 + $0x28] sm:$0xff]   ;;  %v644_v12 = vld [vmem:[%s935_s3 + $0x30] sm:$0xff]  }
  0x2a   :  { %561 = vmatprep.subr.bf16.mxu0 %v738_v0  ;;  %569 = vmatprep.subr.bf16.mxu1 %v738_v0  ;;  %v645_v13 = vld [vmem:[%s935_s3 + $0x38] sm:$0xff]   ;;  %v646_v14 = vld [vmem:[#allocation5] sm:$0xff]   ;;  %v648_v16 = vld [vmem:[#allocation5 + $0x10] sm:$0xff]  }
  0x2b   :  { %v647_v15 = vld [vmem:[#allocation5 + $0x8] sm:$0xff]   ;;  %v649_v17 = vld [vmem:[#allocation5 + $0x18] sm:$0xff]   ;;  %v650_v18 = vld [vmem:[#allocation5 + $0x20] sm:$0xff]  }
  0x2c   :  { %v651_v19 = vld [vmem:[#allocation5 + $0x28] sm:$0xff]   ;;  %v498_v20 = vld [vmem:[%s934_s2] ss:$0 sm:$0xff]  ;;  %v653_v31 = vld [vmem:[#allocation5 + $0x38] sm:$0xff]  }
  0x2d   :  { %562 = vmatpush3.bf16.msra.mxu0 %v637_v2  ;;  %570 = vmatpush3.bf16.msra.mxu1 %v639_v7  ;;  %v652_v30 = vld [vmem:[#allocation5 + $0x30] sm:$0xff]   ;;  %v655_v33 = vld [vmem:[%s939_s7 + $0x8] sm:$0xff]   ;;  %v656_v34 = vld [vmem:[%s939_s7 + $0x10] sm:$0xff]  }
  0x2e   :  { %587 = vmatprep.subr.bf16.mxu0 %v738_v0  ;;  %571 = vmatprep.subr.bf16.mxu1 %v738_v0  ;;  %v654_v32 = vld [vmem:[%s939_s7] sm:$0xff]   ;;  %v657_v35 = vld [vmem:[%s939_s7 + $0x18] sm:$0xff]   ;;  %v659_v37 = vld [vmem:[%s939_s7 + $0x28] sm:$0xff]  }
  0x2f   :  { %v658_v36 = vld [vmem:[%s939_s7 + $0x20] sm:$0xff]   ;;  %v660_v48 = vld [vmem:[%s939_s7 + $0x30] sm:$0xff]   ;;  %v661_v49 = vld [vmem:[%s939_s7 + $0x38] sm:$0xff]   ;;  %s740_s7 = smov [#allocation7]  }
  0x30   :  { %564 = vmatmul.mubr.msk.bf16.vlgmr.msra.gmra.mrb[0].mxu0 %vm88_vm1, %v64_v6  ;;  %v502_v38 = vld [vmem:[%s936_s4] ss:$0 sm:$0xff]  ;;  %s485_s28 = sshll.u32 %s740_s7, 4  ;;  %s486_s28 = int_to_ptr.vmem [resolvable:$true] %s485_s28 }
  0x31   :  { %603 = vmatprep.mubr.msk.bf16.mxu0 %vm739_vm0, %v738_v0  ;;  %572 = vmatpush3.bf16.msra.mxu1 %v640_v8  ;;  %v511_v50 = vld [vmem:[%s938_s6] ss:$0 sm:$0xff]  ;;  %s706_s6 = scalar_lea.vmem %s486_s28, 256  ;;  %p711_p3 = scmp.lt.s32.totalorder %s486_s28, %s486_s28 }
  0x32   :  { %573 = vmatprep.subr.bf16.mxu1 %v738_v0  ;;  %588 = vmatpush3.bf16.msra.mxu0 %v646_v14  ;;  %v520_v60 = vld [vmem:[%s940_s8] ss:$0 sm:$0xff]  ;;  %p707_p2 = scmp.ne.s32.totalorder %s486_s28, %s706_s6  ;;  %p712_p4 = scmp.lt.s32.totalorder %s706_s6, %s706_s6 }
  0x33   :  { %589 = vmatprep.subr.bf16.mxu0 %v738_v0 }
  0x34   :  { %p713_p5 = por %p712_p4, %p711_p3 }
  0x35   :  { %574 = vmatpush3.bf16.msra.mxu1 %v641_v9 }
  0x36   :  { %575 = vmatprep.subr.bf16.mxu1 %v738_v0  ;;  %590 = vmatpush3.bf16.msra.mxu0 %v647_v15  ;;  %p714_p6 = pnand %p713_p5, %p707_p2 }
  0x37   :  { %591 = vmatprep.subr.bf16.mxu0 %v738_v0 }
  0x39   :  { %576 = vmatpush3.bf16.msra.mxu1 %v642_v10 }
  0x3a   :  { %577 = vmatprep.subr.bf16.mxu1 %v738_v0  ;;  %592 = vmatpush3.bf16.msra.mxu0 %v648_v16 }
  0x3b   :  { %593 = vmatprep.subr.bf16.mxu0 %v738_v0 }
  0x3d   :  { %578 = vmatpush3.bf16.msra.mxu1 %v643_v11 }
  0x3e   :  { %579 = vmatprep.subr.bf16.mxu1 %v738_v0  ;;  %594 = vmatpush3.bf16.msra.mxu0 %v649_v17 }
  0x3f   :  { %595 = vmatprep.subr.bf16.mxu0 %v738_v0 }
  0x41   :  { %580 = vmatpush3.bf16.msra.mxu1 %v644_v12 }
  0x42   :  { %581 = vmatprep.subr.bf16.mxu1 %v738_v0  ;;  %596 = vmatpush3.bf16.msra.mxu0 %v650_v18 }
  0x43   :  { %597 = vmatprep.subr.bf16.mxu0 %v738_v0 }
  0x45   :  { %582 = vmatpush3.bf16.msra.mxu1 %v645_v13 }
  0x46   :  { %607 = vmatprep.subr.bf16.mxu1 %v738_v0  ;;  %598 = vmatpush3.bf16.msra.mxu0 %v651_v19 }
  0x47   :  { %599 = vmatprep.subr.bf16.mxu0 %v738_v0 }
  0x4a   :  { %600 = vmatpush3.bf16.msra.mxu0 %v652_v30 }
  0x4b   :  { %601 = vmatprep.subr.bf16.mxu0 %v738_v0 }
  0x4e   :  { %602 = vmatpush3.bf16.msra.mxu0 %v653_v31 }
 0x103   :  { %v126_v21 = vpop.f32.mrb[0].mxu0 }
 0x104   :  { %v127_v22 = vadd.f32 %v498_v20, %v126_v21  ;;  %v565_v23 = vpop.f32.mrb[1].mxu0 }
 0x105   :  { %v129_v24 = vpop.f32.mrb[2].mxu0 }
 0x106   :  { %v130_v25 = vadd.f32 %v498_v20, %v129_v24  ;;  %v566_v26 = vpop.f32.mrb[3].mxu0  ;;  %v133_v27 = vmax.f32 %v127_v22, 0.0 }
 0x108   :  { %v134_v28 = vmax.f32 %v130_v25, 0.0 }
 0x10a   :  { %v135_v29 = vpack.c.bf16 %v134_v28, %v133_v27 }
 0x10c   :  { %584 = vmatmul.mubr.bf16.vlgmr.msra.gmra.mrb[0].mxu1 %v135_v29 }
 0x10d   :  { %623 = vmatprep.mubr.msk.bf16.mxu1 %vm739_vm0, %v738_v0  ;;  %608 = vmatpush3.bf16.msra.mxu1 %v654_v32 }
 0x10e   :  { %609 = vmatprep.subr.bf16.mxu1 %v738_v0 }
 0x111   :  { %610 = vmatpush3.bf16.msra.mxu1 %v655_v33 }
 0x112   :  { %611 = vmatprep.subr.bf16.mxu1 %v738_v0 }
 0x115   :  { %612 = vmatpush3.bf16.msra.mxu1 %v656_v34 }
 0x116   :  { %613 = vmatprep.subr.bf16.mxu1 %v738_v0 }
 0x119   :  { %614 = vmatpush3.bf16.msra.mxu1 %v657_v35 }
 0x11a   :  { %615 = vmatprep.subr.bf16.mxu1 %v738_v0 }
 0x11d   :  { %616 = vmatpush3.bf16.msra.mxu1 %v658_v36 }
 0x11e   :  { %617 = vmatprep.subr.bf16.mxu1 %v738_v0 }
 0x121   :  { %618 = vmatpush3.bf16.msra.mxu1 %v659_v37 }
 0x122   :  { %619 = vmatprep.subr.bf16.mxu1 %v738_v0 }
 0x125   :  { %620 = vmatpush3.bf16.msra.mxu1 %v660_v48 }
 0x126   :  { %621 = vmatprep.subr.bf16.mxu1 %v738_v0 }
 0x129   :  { %622 = vmatpush3.bf16.msra.mxu1 %v661_v49 }
 0x1df   :  { %v241_v39 = vpop.f32.mrb[0].mxu1 }
 0x1e0   :  { %v242_v40 = vadd.f32 %v502_v38, %v241_v39  ;;  %v585_v41 = vpop.f32.mrb[1].mxu1 }
 0x1e1   :  { %v244_v42 = vpop.f32.mrb[2].mxu1 }
 0x1e2   :  { %v245_v43 = vadd.f32 %v502_v38, %v244_v42  ;;  %v586_v44 = vpop.f32.mrb[3].mxu1  ;;  %v248_v45 = vmax.f32 %v242_v40, 0.0 }
 0x1e4   :  { %v249_v46 = vmax.f32 %v245_v43, 0.0 }
 0x1e6   :  { %v250_v47 = vpack.c.bf16 %v249_v46, %v248_v45 }
 0x1e8   :  { %604 = vmatmul.mubr.bf16.vlgmr.msra.gmra.mrb[4].mxu0 %v250_v47 }
 0x2bb   :  { %v356_v51 = vpop.f32.mrb[4].mxu0 }
 0x2bc   :  { %v357_v52 = vadd.f32 %v511_v50, %v356_v51  ;;  %v605_v53 = vpop.f32.mrb[5].mxu0 }
 0x2bd   :  { %v359_v54 = vpop.f32.mrb[6].mxu0 }
 0x2be   :  { %v360_v55 = vadd.f32 %v511_v50, %v359_v54  ;;  %v606_v56 = vpop.f32.mrb[7].mxu0  ;;  %v363_v57 = vmax.f32 %v357_v52, 0.0 }
 0x2c0   :  { %v364_v58 = vmax.f32 %v360_v55, 0.0 }
 0x2c2   :  { %v365_v59 = vpack.c.bf16 %v364_v58, %v363_v57 }
 0x2c4   :  { %624 = vmatmul.mubr.bf16.vlgmr.msra.gmra.mrb[4].mxu1 %v365_v59 }
 0x397   :  { %v471_v61 = vpop.f32.mrb[4].mxu1 }
 0x398   :  { %v472_v62 = vadd.f32 %v520_v60, %v471_v61  ;;  %v625_v63 = vpop.f32.mrb[5].mxu1 }
 0x399   :  { %v474_v0 = vpop.f32.mrb[6].mxu1 }
 0x39a   :  { %478 = vst.msk [vmem:[#allocation7] sm:$0xff] %vm88_vm1, %v472_v62  ;;  %v475_v1 = vadd.f32 %v520_v60, %v474_v0  ;;  %v626_v2 = vpop.f32.mrb[7].mxu1 }
 0x39c   :  { %479 = vst.msk [vmem:[#allocation7 + $0x8] sm:$0xff] %vm88_vm1, %v475_v1 }
 0x39d   :  { %717 = shalt.err (!%p714_p6)
}
 0x39e   :  { %s718_s30 = scalar_lea.hbm %s941_s9, 256 }
 0x39f   :  { %p719_p7 = scmp.ne.s32.totalorder %s941_s9, %s718_s30  ;;  %p722_p8 = scmp.lt.u32.totalorder %s718_s30, %s941_s9 }
 0x3a1   :  { %p724_p9 = pnand %p722_p8, %p719_p7 }
 0x3a3   :  { %727 = shalt.err (!%p724_p9)
}
 0x3a4   :  { %s741_s1 = smov 128   ;;  %s742_s10 = smov 8  }
 0x3a5   :  { %491 = dma.vmem_to_hbm [thread:$0]  %s486_s28, 256, %s941_s9, [#allocation4], %s741_s1, %s741_s1, %s742_s10  }
 0x3a6   :  { %732 = dma.done.wait [#allocation4], 256  }
 0x3a7   :  { %733 = vsyncadd [#allocation4], 4294967040 }
 0x3a8   :  { %495 = vsyncpa [#allocation3], 1 }
 0x3a9   :  { %496 = vsyncpa [#allocation6], 1 }
 0x3aa   :  { %497 = vsyncpa [#allocation4], 1 }

</bundles_post_ra>
